<compile_context>
chip_gen: v7x
topology: tpu7x:2x2x1
jax: 0.10.0
libtpu: 0.0.40
codegen_flags: <defaults>
</compile_context>

<pallas_src>
from functools import partial

import jax
import jax.numpy as jnp
import numpy as np
from jax.experimental import pallas as pl
from jax.experimental.pallas import tpu as pltpu

# ---------------- config (small, deterministic) ----------------
B = 8          # batch
N_IPRS = 128   # len(iprs_dict)
EMB = 64       # emb_dim  (fc_1 out = 2*EMB = 128)
N_TERMS = 32   # len(terms_dict) + len(zero_classes)
N_Y = 8        # terms per sample; column 0 = positive, 1: = unlabeled
N_SUB = 8      # subsumption pairs per sample
PRIOR = 0.3
PUC = 0        # 0 -> pur_loss, else puc_loss
DO = 0.1       # dropout rate (identity here, see TODO above)

F32 = jnp.float32
BF16 = jnp.bfloat16


# ---------------- in-kernel numerics helpers (all f32) ----------------
def _log_sigmoid(x):
    # numerically stable log(sigmoid(x))
    return jnp.minimum(x, 0.0) - jnp.log1p(jnp.exp(-jnp.abs(x)))


def _sigmoid(x):
    return 1.0 / (1.0 + jnp.exp(-x))


def _head_loss(pred, prior, puc):
    """Loss for one head from a lane-packed (B, N) score tile.

    pred[:, 0] is the positive score column, pred[:, 1:] the unlabeled ones.
    Mirrors PUGO.pur_loss / PUGO.puc_loss exactly; `prior`/`puc` are Python constants.
    """
    bsz, n = pred.shape
    n_rest = n - 1
    p0 = pred[:, 0:1]          # (B, 1)
    rest = pred[:, 1:]         # (B, N-1)
    if puc == 0:
        # one packed log-sigmoid over [p0, -p0, p0 - rest]  -> (B, N+1)
        packed = jnp.concatenate([p0, -p0, p0 - rest], axis=1)
        ls = _log_sigmoid(packed)
        p_above = -jnp.sum(ls[:, 0:1]) / bsz
        p_below = -jnp.sum(ls[:, 1:2]) / bsz
        u = -jnp.sum(ls[:, 2:]) / (bsz * n_rest)
        # original data-dependent `if u > prior*p_below`:
        return prior * p_above + jnp.where(u > prior * p_below,
                                           u - prior * p_below, 0.0)
    else:
        # keep the original (PyTorch) formulation incl. the 1e-10 fudge
        lg = jnp.log(1.0 - _sigmoid(pred) + 1e-10)      # (B, N), one packed chain
        p_above = -jnp.sum(_log_sigmoid(p0)) / bsz
        p_below = jnp.sum(lg[:, 0:1]) / bsz
        u = -jnp.sum(lg[:, 1:]) / (bsz * n_rest)
        return prior * p_above - prior * p_below + u


# ---------------- the single fused kernel ----------------
def _make_pugo_kernel(prior, puc):
    prior = float(prior)
    puc = int(puc)

    def kernel(x_ref, w1_ref, b1_ref, wp_ref, bp_ref, y_ref,
               c1e_ref, c2e_ref, s_ref, o_ref):
        # ---- MLP + folded term projection on the MXU (dropout = eval identity) ----
        # h = relu(fc_1(X));  logits = fc_2(h) @ emb.T  ==  h @ (w2@emb.T) + b2@emb.T
        h = jnp.dot(x_ref[...], w1_ref[...], preferred_element_type=F32) + b1_ref[...]
        h = jnp.maximum(h, 0.0).astype(BF16)
        logits = jnp.dot(h, wp_ref[...], preferred_element_type=F32) + bp_ref[...]  # (B, N_TERMS) f32

        bsz, n_terms = logits.shape
        n_y = y_ref.shape[1]

        # ---- pred_pf[:, n] = logits[b, Y[b, n]] via one-hot lane selects ----
        # (assumes 0 <= Y < N_TERMS; out-of-range indices yield 0, as before)
        y = y_ref[...]                                                      # (B, N_Y) int32
        lane_iota = jax.lax.broadcasted_iota(jnp.int32, (bsz, n_terms), 1)  # (B, N_TERMS)
        cols = []
        for n in range(n_y):                                                # tiny static unroll
            onehot = (lane_iota == y[:, n:n + 1]).astype(F32)               # (B, N_TERMS)
            cols.append(jnp.sum(logits * onehot, axis=-1, keepdims=True))   # (B, 1)
        pred_pf = jnp.concatenate(cols, axis=1)                             # (B, N_Y) lane-packed

        # ---- pred_sub: one full-tile multiply + one MXU matmul vs. block-ones S ----
        # c1e/c2e are (B, N_SUB*EMB); S is (N_SUB*EMB, N_SUB) group-sum selector.
        prod = c1e_ref[...] * c2e_ref[...]                                  # (B, N_SUB*EMB) f32
        pred_sub = jnp.dot(prod, s_ref[...], preferred_element_type=F32)    # (B, N_SUB)

        # ---- packed loss epilogue: two scalars straight to SMEM ----
        o_ref[0] = _head_loss(pred_pf, prior, puc)
        o_ref[1] = _head_loss(pred_sub, prior, puc)

    return kernel


def _group_sum_matrix(n_groups, group_size):
    # (n_groups*group_size, n_groups), S[g*group_size + d, g] = 1
    return np.kron(np.eye(n_groups, dtype=np.float32),
                   np.ones((group_size, 1), dtype=np.float32))


# ---------------- forward (one jitted program, one pallas_call) ----------------
@partial(jax.jit, static_argnums=(4, 5))
def _pugo_forward_jit(params, X, Y, Sub, prior, puc):
    emb = params["emb"]                                   # (N_TERMS, EMB) f32
    bsz = X.shape[0]
    n_sub = Sub.shape[1]
    emb_dim = emb.shape[1]

    # fold fc_2 into the term projection (tiny, fuses with the custom call inputs)
    wp = jnp.dot(params["w2"], emb.T).astype(BF16)        # (2*EMB, N_TERMS) bf16
    bp = jnp.dot(params["b2"], emb.T)                     # (1, N_TERMS) f32

    # tiny pre-gathers for the subsumption head, lane-flattened to (B, N_SUB*EMB)
    c1e = jnp.take(emb, Sub[:, :, 0], axis=0).reshape(bsz, n_sub * emb_dim)
    c2e = jnp.take(emb, Sub[:, :, 1], axis=0).reshape(bsz, n_sub * emb_dim)

    # compile-time constant group-sum selector for the sub head
    s_sel = jnp.asarray(_group_sum_matrix(n_sub, emb_dim))   # (N_SUB*EMB, N_SUB) f32

    x_bf = X.astype(BF16)
    w1_bf = params["w1"].astype(BF16)

    n_in = 9
    out = pl.pallas_call(
        _make_pugo_kernel(prior, puc),
        out_shape=jax.ShapeDtypeStruct((2,), F32),
        in_specs=[pl.BlockSpec(memory_space=pltpu.MemorySpace.VMEM)
                  for _ in range(n_in)],
        out_specs=pl.BlockSpec(memory_space=pltpu.MemorySpace.SMEM),
        compiler_params=pltpu.CompilerParams(
            allow_input_fusion=[True] * n_in),
    )(x_bf, w1_bf, params["b1"], wp, bp,
      Y.astype(jnp.int32), c1e, c2e, s_sel)
    return out[0], out[1]


def pugo_forward(params, X, Y, Sub, prior=PRIOR, puc=PUC):
    return _pugo_forward_jit(params, X, Y, Sub, float(prior), int(puc))


# ---------------- pure-JAX f32 reference (faithful to the PyTorch module) ----------------
def reference_forward(params, X, Y, Sub, prior=PRIOR, puc=PUC):
    h = jnp.maximum(X @ params["w1"] + params["b1"], 0.0)
    X_emb = h @ params["w2"] + params["b2"]
    table = params["emb"]
    Y_emb = jnp.take(table, Y, axis=0)
    pred_pf = jnp.sum(X_emb[:, None, :] * Y_emb, axis=-1)
    c1 = jnp.take(table, Sub[:, :, 0], axis=0)
    c2 = jnp.take(table, Sub[:, :, 1], axis=0)
    pred_sub = jnp.sum(c1 * c2, axis=-1)

    def ref_pur(pred):
        p_above = -jnp.mean(jax.nn.log_sigmoid(pred[:, 0]))
        p_below = -jnp.mean(jax.nn.log_sigmoid(-pred[:, 0]))
        u = -jnp.mean(jax.nn.log_sigmoid(pred[:, 0:1] - pred[:, 1:]))
        return jnp.where(u > prior * p_below,
                         prior * p_above - prior * p_below + u,
                         prior * p_above)

    def ref_puc(pred):
        p_above = -jnp.mean(jax.nn.log_sigmoid(pred[:, 0]))
        p_below = jnp.mean(jnp.log(1.0 - jax.nn.sigmoid(pred[:, 0]) + 1e-10))
        u = -jnp.mean(jnp.log(1.0 - jax.nn.sigmoid(pred[:, 1:]) + 1e-10))
        return prior * p_above - prior * p_below + u

    if puc == 0:
        return ref_pur(pred_pf), ref_pur(pred_sub)
    return ref_puc(pred_pf), ref_puc(pred_sub)


# ---------------- deterministic parameter init (xavier_uniform) ----------------
def init_params(key):
    k_emb, k_w1, k_b1, k_w2, k_b2 = jax.random.split(key, 5)

    def xavier(k, shape, fan_in, fan_out):
        bound = np.sqrt(6.0 / (fan_in + fan_out))
        return jax.random.uniform(k, shape, F32, -bound, bound)

    emb = xavier(k_emb, (N_TERMS, EMB), N_TERMS, EMB)
    w1 = xavier(k_w1, (N_IPRS, 2 * EMB), N_IPRS, 2 * EMB)   # [in, out]
    w2 = xavier(k_w2, (2 * EMB, EMB), 2 * EMB, EMB)
    b1 = jax.random.uniform(k_b1, (1, 2 * EMB), F32,
                            -1.0 / np.sqrt(N_IPRS), 1.0 / np.sqrt(N_IPRS))
    b2 = jax.random.uniform(k_b2, (1, EMB), F32,
                            -1.0 / np.sqrt(2 * EMB), 1.0 / np.sqrt(2 * EMB))
    return {"emb": emb, "w1": w1, "b1": b1, "w2": w2, "b2": b2}


if __name__ == "__main__":
    key = jax.random.PRNGKey(0)
    k_p, k_x, k_y, k_s = jax.random.split(key, 4)

    params = init_params(k_p)
    X = jax.random.normal(k_x, (B, N_IPRS), F32)
    Y = jax.random.randint(k_y, (B, N_Y), 0, N_TERMS, jnp.int32)
    Sub = jax.random.randint(k_s, (B, N_SUB, 2), 0, N_TERMS, jnp.int32)

    # tolerances: the pf head uses bf16 MXU operands (f32 accumulation) -> ~0.5% error
    # vs. the pure-f32 reference; the sub head stays f32 end-to-end -> tight.
    TOL_PF = dict(rtol=2e-2, atol=2e-2)
    TOL_SUB = dict(rtol=1e-3, atol=1e-3)

    # pur (puc=0) path
    loss_pf, loss_sub = pugo_forward(params, X, Y, Sub)
    loss_pf = jax.block_until_ready(loss_pf)
    loss_sub = jax.block_until_ready(loss_sub)
    ref_pf, ref_sub = reference_forward(params, X, Y, Sub)
    np.testing.assert_allclose(np.asarray(loss_pf), np.asarray(ref_pf), **TOL_PF)
    np.testing.assert_allclose(np.asarray(loss_sub), np.asarray(ref_sub), **TOL_SUB)

    # puc (puc=1) path
    loss_pf_c, loss_sub_c = pugo_forward(params, X, Y, Sub, puc=1)
    loss_pf_c = jax.block_until_ready(loss_pf_c)
    loss_sub_c = jax.block_until_ready(loss_sub_c)
    ref_pf_c, ref_sub_c = reference_forward(params, X, Y, Sub, puc=1)
    np.testing.assert_allclose(np.asarray(loss_pf_c), np.asarray(ref_pf_c), **TOL_PF)
    np.testing.assert_allclose(np.asarray(loss_sub_c), np.asarray(ref_sub_c), **TOL_SUB)

    print("KERNEL_OK")
</pallas_src>

<mosaic_0001>
module attributes {stable_mosaic.version = 11 : i64} {
  func.func @kernel(%arg0: memref<8x128xbf16, #tpu.memory_space<vmem>>, %arg1: memref<128x128xbf16, #tpu.memory_space<vmem>>, %arg2: memref<1x128xf32, #tpu.memory_space<vmem>>, %arg3: memref<128x32xbf16, #tpu.memory_space<vmem>>, %arg4: memref<1x32xf32, #tpu.memory_space<vmem>>, %arg5: memref<8x8xi32, #tpu.memory_space<vmem>>, %arg6: memref<8x512xf32, #tpu.memory_space<vmem>>, %arg7: memref<8x512xf32, #tpu.memory_space<vmem>>, %arg8: memref<512x8xf32, #tpu.memory_space<vmem>>, %arg9: memref<2xf32, #tpu.memory_space<smem>>) attributes {dimension_semantics = [], scalar_prefetch = 0 : i64, scratch_operands = 0 : i64, tpu.core_type = #tpu.core_type<tc>} {
    %c0 = arith.constant 0 : index
    %c0_0 = arith.constant 0 : index
    %0 = vector.load %arg0[%c0, %c0_0] : memref<8x128xbf16, #tpu.memory_space<vmem>>, vector<8x128xbf16>
    %c0_1 = arith.constant 0 : index
    %c0_2 = arith.constant 0 : index
    %1 = vector.load %arg1[%c0_1, %c0_2] : memref<128x128xbf16, #tpu.memory_space<vmem>>, vector<128x128xbf16>
    %cst = arith.constant dense<0.000000e+00> : vector<8x128xf32>
    %2 = tpu.matmul %0, %1, %cst {dimension_numbers = #tpu.dot_dimension_numbers<[1], [0], [0], [1], [0, 0, 1, 1], [], []>} : vector<8x128xbf16>, vector<128x128xbf16>, vector<8x128xf32> -> vector<8x128xf32>
    %c0_3 = arith.constant 0 : index
    %c0_4 = arith.constant 0 : index
    %3 = vector.load %arg2[%c0_3, %c0_4] : memref<1x128xf32, #tpu.memory_space<vmem>>, vector<1x128xf32>
    %4 = vector.broadcast %3 : vector<1x128xf32> to vector<8x128xf32>
    %5 = arith.addf %2, %4 : vector<8x128xf32>
    %cst_5 = arith.constant 0.000000e+00 : f32
    %6 = vector.broadcast %cst_5 : f32 to vector<8x128xf32>
    %7 = arith.maximumf %5, %6 : vector<8x128xf32>
    %8 = arith.truncf %7 : vector<8x128xf32> to vector<8x128xbf16>
    %c0_6 = arith.constant 0 : index
    %c0_7 = arith.constant 0 : index
    %9 = vector.load %arg3[%c0_6, %c0_7] : memref<128x32xbf16, #tpu.memory_space<vmem>>, vector<128x32xbf16>
    %cst_8 = arith.constant dense<0.000000e+00> : vector<8x32xf32>
    %10 = tpu.matmul %8, %9, %cst_8 {dimension_numbers = #tpu.dot_dimension_numbers<[1], [0], [0], [1], [0, 0, 1, 1], [], []>} : vector<8x128xbf16>, vector<128x32xbf16>, vector<8x32xf32> -> vector<8x32xf32>
    %c0_9 = arith.constant 0 : index
    %c0_10 = arith.constant 0 : index
    %11 = vector.load %arg4[%c0_9, %c0_10] : memref<1x32xf32, #tpu.memory_space<vmem>>, vector<1x32xf32>
    %12 = vector.broadcast %11 : vector<1x32xf32> to vector<8x32xf32>
    %13 = arith.addf %10, %12 : vector<8x32xf32>
    %c0_11 = arith.constant 0 : index
    %c0_12 = arith.constant 0 : index
    %14 = vector.load %arg5[%c0_11, %c0_12] : memref<8x8xi32, #tpu.memory_space<vmem>>, vector<8x8xi32>
    %15 = tpu.iota {dimensions = array<i32: 1>} : vector<8x32xi32>
    %16 = vector.extract_strided_slice %14 {offsets = [0, 0], sizes = [8, 1], strides = [1, 1]} : vector<8x8xi32> to vector<8x1xi32>
    %17 = vector.broadcast %16 : vector<8x1xi32> to vector<8x32xi32>
    %18 = arith.cmpi eq, %15, %17 : vector<8x32xi32>
    %19 = arith.extui %18 : vector<8x32xi1> to vector<8x32xi32>
    %20 = arith.sitofp %19 : vector<8x32xi32> to vector<8x32xf32>
    %21 = arith.mulf %13, %20 : vector<8x32xf32>
    %cst_13 = arith.constant dense<0.000000e+00> : vector<8xf32>
    %22 = vector.multi_reduction <add>, %21, %cst_13 [1] : vector<8x32xf32> to vector<8xf32>
    %23 = vector.shape_cast %22 : vector<8xf32> to vector<8x1xf32>
    %24 = vector.extract_strided_slice %14 {offsets = [0, 1], sizes = [8, 1], strides = [1, 1]} : vector<8x8xi32> to vector<8x1xi32>
    %25 = vector.broadcast %24 : vector<8x1xi32> to vector<8x32xi32>
    %26 = arith.cmpi eq, %15, %25 : vector<8x32xi32>
    %27 = arith.extui %26 : vector<8x32xi1> to vector<8x32xi32>
    %28 = arith.sitofp %27 : vector<8x32xi32> to vector<8x32xf32>
    %29 = arith.mulf %13, %28 : vector<8x32xf32>
    %cst_14 = arith.constant dense<0.000000e+00> : vector<8xf32>
    %30 = vector.multi_reduction <add>, %29, %cst_14 [1] : vector<8x32xf32> to vector<8xf32>
    %31 = vector.shape_cast %30 : vector<8xf32> to vector<8x1xf32>
    %32 = vector.extract_strided_slice %14 {offsets = [0, 2], sizes = [8, 1], strides = [1, 1]} : vector<8x8xi32> to vector<8x1xi32>
    %33 = vector.broadcast %32 : vector<8x1xi32> to vector<8x32xi32>
    %34 = arith.cmpi eq, %15, %33 : vector<8x32xi32>
    %35 = arith.extui %34 : vector<8x32xi1> to vector<8x32xi32>
    %36 = arith.sitofp %35 : vector<8x32xi32> to vector<8x32xf32>
    %37 = arith.mulf %13, %36 : vector<8x32xf32>
    %cst_15 = arith.constant dense<0.000000e+00> : vector<8xf32>
    %38 = vector.multi_reduction <add>, %37, %cst_15 [1] : vector<8x32xf32> to vector<8xf32>
    %39 = vector.shape_cast %38 : vector<8xf32> to vector<8x1xf32>
    %40 = vector.extract_strided_slice %14 {offsets = [0, 3], sizes = [8, 1], strides = [1, 1]} : vector<8x8xi32> to vector<8x1xi32>
    %41 = vector.broadcast %40 : vector<8x1xi32> to vector<8x32xi32>
    %42 = arith.cmpi eq, %15, %41 : vector<8x32xi32>
    %43 = arith.extui %42 : vector<8x32xi1> to vector<8x32xi32>
    %44 = arith.sitofp %43 : vector<8x32xi32> to vector<8x32xf32>
    %45 = arith.mulf %13, %44 : vector<8x32xf32>
    %cst_16 = arith.constant dense<0.000000e+00> : vector<8xf32>
    %46 = vector.multi_reduction <add>, %45, %cst_16 [1] : vector<8x32xf32> to vector<8xf32>
    %47 = vector.shape_cast %46 : vector<8xf32> to vector<8x1xf32>
    %48 = vector.extract_strided_slice %14 {offsets = [0, 4], sizes = [8, 1], strides = [1, 1]} : vector<8x8xi32> to vector<8x1xi32>
    %49 = vector.broadcast %48 : vector<8x1xi32> to vector<8x32xi32>
    %50 = arith.cmpi eq, %15, %49 : vector<8x32xi32>
    %51 = arith.extui %50 : vector<8x32xi1> to vector<8x32xi32>
    %52 = arith.sitofp %51 : vector<8x32xi32> to vector<8x32xf32>
    %53 = arith.mulf %13, %52 : vector<8x32xf32>
    %cst_17 = arith.constant dense<0.000000e+00> : vector<8xf32>
    %54 = vector.multi_reduction <add>, %53, %cst_17 [1] : vector<8x32xf32> to vector<8xf32>
    %55 = vector.shape_cast %54 : vector<8xf32> to vector<8x1xf32>
    %56 = vector.extract_strided_slice %14 {offsets = [0, 5], sizes = [8, 1], strides = [1, 1]} : vector<8x8xi32> to vector<8x1xi32>
    %57 = vector.broadcast %56 : vector<8x1xi32> to vector<8x32xi32>
    %58 = arith.cmpi eq, %15, %57 : vector<8x32xi32>
    %59 = arith.extui %58 : vector<8x32xi1> to vector<8x32xi32>
    %60 = arith.sitofp %59 : vector<8x32xi32> to vector<8x32xf32>
    %61 = arith.mulf %13, %60 : vector<8x32xf32>
    %cst_18 = arith.constant dense<0.000000e+00> : vector<8xf32>
    %62 = vector.multi_reduction <add>, %61, %cst_18 [1] : vector<8x32xf32> to vector<8xf32>
    %63 = vector.shape_cast %62 : vector<8xf32> to vector<8x1xf32>
    %64 = vector.extract_strided_slice %14 {offsets = [0, 6], sizes = [8, 1], strides = [1, 1]} : vector<8x8xi32> to vector<8x1xi32>
    %65 = vector.broadcast %64 : vector<8x1xi32> to vector<8x32xi32>
    %66 = arith.cmpi eq, %15, %65 : vector<8x32xi32>
    %67 = arith.extui %66 : vector<8x32xi1> to vector<8x32xi32>
    %68 = arith.sitofp %67 : vector<8x32xi32> to vector<8x32xf32>
    %69 = arith.mulf %13, %68 : vector<8x32xf32>
    %cst_19 = arith.constant dense<0.000000e+00> : vector<8xf32>
    %70 = vector.multi_reduction <add>, %69, %cst_19 [1] : vector<8x32xf32> to vector<8xf32>
    %71 = vector.shape_cast %70 : vector<8xf32> to vector<8x1xf32>
    %72 = vector.extract_strided_slice %14 {offsets = [0, 7], sizes = [8, 1], strides = [1, 1]} : vector<8x8xi32> to vector<8x1xi32>
    %73 = vector.broadcast %72 : vector<8x1xi32> to vector<8x32xi32>
    %74 = arith.cmpi eq, %15, %73 : vector<8x32xi32>
    %75 = arith.extui %74 : vector<8x32xi1> to vector<8x32xi32>
    %76 = arith.sitofp %75 : vector<8x32xi32> to vector<8x32xf32>
    %77 = arith.mulf %13, %76 : vector<8x32xf32>
    %cst_20 = arith.constant dense<0.000000e+00> : vector<8xf32>
    %78 = vector.multi_reduction <add>, %77, %cst_20 [1] : vector<8x32xf32> to vector<8xf32>
    %79 = vector.shape_cast %78 : vector<8xf32> to vector<8x1xf32>
    %80 = tpu.concatenate %23, %31, %39, %47, %55, %63, %71, %79 in 1 : vector<8x1xf32>, vector<8x1xf32>, vector<8x1xf32>, vector<8x1xf32>, vector<8x1xf32>, vector<8x1xf32>, vector<8x1xf32>, vector<8x1xf32> -> vector<8x8xf32>
    %c0_21 = arith.constant 0 : index
    %c0_22 = arith.constant 0 : index
    %81 = vector.load %arg6[%c0_21, %c0_22] : memref<8x512xf32, #tpu.memory_space<vmem>>, vector<8x512xf32>
    %c0_23 = arith.constant 0 : index
    %c0_24 = arith.constant 0 : index
    %82 = vector.load %arg7[%c0_23, %c0_24] : memref<8x512xf32, #tpu.memory_space<vmem>>, vector<8x512xf32>
    %83 = arith.mulf %81, %82 : vector<8x512xf32>
    %c0_25 = arith.constant 0 : index
    %c0_26 = arith.constant 0 : index
    %84 = vector.load %arg8[%c0_25, %c0_26] : memref<512x8xf32, #tpu.memory_space<vmem>>, vector<512x8xf32>
    %cst_27 = arith.constant dense<0.000000e+00> : vector<8x8xf32>
    %85 = tpu.matmul %83, %84, %cst_27 {dimension_numbers = #tpu.dot_dimension_numbers<[1], [0], [0], [1], [0, 0, 1, 1], [], []>} : vector<8x512xf32>, vector<512x8xf32>, vector<8x8xf32> -> vector<8x8xf32>
    %86 = vector.extract_strided_slice %80 {offsets = [0, 0], sizes = [8, 1], strides = [1, 1]} : vector<8x8xf32> to vector<8x1xf32>
    %87 = vector.extract_strided_slice %80 {offsets = [0, 1], sizes = [8, 7], strides = [1, 1]} : vector<8x8xf32> to vector<8x7xf32>
    %cst_28 = arith.constant 0.000000e+00 : f32
    %88 = vector.broadcast %cst_28 : f32 to vector<8x1xf32>
    %89 = arith.subf %88, %86 : vector<8x1xf32>
    %90 = vector.broadcast %86 : vector<8x1xf32> to vector<8x7xf32>
    %91 = arith.subf %90, %87 : vector<8x7xf32>
    %92 = tpu.concatenate %86, %89, %91 in 1 : vector<8x1xf32>, vector<8x1xf32>, vector<8x7xf32> -> vector<8x9xf32>
    %cst_29 = arith.constant 0.000000e+00 : f32
    %93 = vector.broadcast %cst_29 : f32 to vector<8x9xf32>
    %94 = arith.minimumf %92, %93 : vector<8x9xf32>
    %95 = math.absf %92 : vector<8x9xf32>
    %cst_30 = arith.constant 0.000000e+00 : f32
    %96 = vector.broadcast %cst_30 : f32 to vector<8x9xf32>
    %97 = arith.subf %96, %95 : vector<8x9xf32>
    %98 = math.exp %97 : vector<8x9xf32>
    %99 = math.log1p %98 : vector<8x9xf32>
    %100 = arith.subf %94, %99 : vector<8x9xf32>
    %101 = vector.extract_strided_slice %100 {offsets = [0, 0], sizes = [8, 1], strides = [1, 1]} : vector<8x9xf32> to vector<8x1xf32>
    %102 = vector.shape_cast %101 : vector<8x1xf32> to vector<1x8x1xf32>
    %cst_31 = arith.constant dense<0.000000e+00> : vector<1xf32>
    %103 = vector.multi_reduction <add>, %102, %cst_31 [1, 2] : vector<1x8x1xf32> to vector<1xf32>
    %104 = vector.shape_cast %103 : vector<1xf32> to vector<1x1x1xf32>
    %105 = vector.extract %104[0, 0, 0] : f32 from vector<1x1x1xf32>
    %cst_32 = arith.constant 0.000000e+00 : f32
    %106 = arith.subf %cst_32, %105 : f32
    %cst_33 = arith.constant 8.000000e+00 : f32
    %107 = arith.divf %106, %cst_33 : f32
    %108 = vector.extract_strided_slice %100 {offsets = [0, 1], sizes = [8, 1], strides = [1, 1]} : vector<8x9xf32> to vector<8x1xf32>
    %109 = vector.shape_cast %108 : vector<8x1xf32> to vector<1x8x1xf32>
    %cst_34 = arith.constant dense<0.000000e+00> : vector<1xf32>
    %110 = vector.multi_reduction <add>, %109, %cst_34 [1, 2] : vector<1x8x1xf32> to vector<1xf32>
    %111 = vector.shape_cast %110 : vector<1xf32> to vector<1x1x1xf32>
    %112 = vector.extract %111[0, 0, 0] : f32 from vector<1x1x1xf32>
    %cst_35 = arith.constant 0.000000e+00 : f32
    %113 = arith.subf %cst_35, %112 : f32
    %cst_36 = arith.constant 8.000000e+00 : f32
    %114 = arith.divf %113, %cst_36 : f32
    %115 = vector.extract_strided_slice %100 {offsets = [0, 2], sizes = [8, 7], strides = [1, 1]} : vector<8x9xf32> to vector<8x7xf32>
    %116 = vector.shape_cast %115 : vector<8x7xf32> to vector<1x8x7xf32>
    %cst_37 = arith.constant dense<0.000000e+00> : vector<1xf32>
    %117 = vector.multi_reduction <add>, %116, %cst_37 [1, 2] : vector<1x8x7xf32> to vector<1xf32>
    %118 = vector.shape_cast %117 : vector<1xf32> to vector<1x1x1xf32>
    %119 = vector.extract %118[0, 0, 0] : f32 from vector<1x1x1xf32>
    %cst_38 = arith.constant 0.000000e+00 : f32
    %120 = arith.subf %cst_38, %119 : f32
    %cst_39 = arith.constant 5.600000e+01 : f32
    %121 = arith.divf %120, %cst_39 : f32
    %cst_40 = arith.constant 3.000000e-01 : f32
    %122 = arith.mulf %cst_40, %107 : f32
    %cst_41 = arith.constant 3.000000e-01 : f32
    %123 = arith.mulf %cst_41, %114 : f32
    %124 = arith.cmpf ogt, %121, %123 : f32
    %cst_42 = arith.constant 3.000000e-01 : f32
    %125 = arith.mulf %cst_42, %114 : f32
    %126 = arith.subf %121, %125 : f32
    %cst_43 = arith.constant 0.000000e+00 : f32
    %127 = arith.select %124, %126, %cst_43 : f32
    %128 = arith.addf %122, %127 : f32
    %c0_44 = arith.constant 0 : index
    %129 = memref.load %arg9[%c0_44] : memref<2xf32, #tpu.memory_space<smem>>
    memref.store %128, %arg9[%c0_44] : memref<2xf32, #tpu.memory_space<smem>>
    %130 = vector.extract_strided_slice %85 {offsets = [0, 0], sizes = [8, 1], strides = [1, 1]} : vector<8x8xf32> to vector<8x1xf32>
    %131 = vector.extract_strided_slice %85 {offsets = [0, 1], sizes = [8, 7], strides = [1, 1]} : vector<8x8xf32> to vector<8x7xf32>
    %cst_45 = arith.constant 0.000000e+00 : f32
    %132 = vector.broadcast %cst_45 : f32 to vector<8x1xf32>
    %133 = arith.subf %132, %130 : vector<8x1xf32>
    %134 = vector.broadcast %130 : vector<8x1xf32> to vector<8x7xf32>
    %135 = arith.subf %134, %131 : vector<8x7xf32>
    %136 = tpu.concatenate %130, %133, %135 in 1 : vector<8x1xf32>, vector<8x1xf32>, vector<8x7xf32> -> vector<8x9xf32>
    %cst_46 = arith.constant 0.000000e+00 : f32
    %137 = vector.broadcast %cst_46 : f32 to vector<8x9xf32>
    %138 = arith.minimumf %136, %137 : vector<8x9xf32>
    %139 = math.absf %136 : vector<8x9xf32>
    %cst_47 = arith.constant 0.000000e+00 : f32
    %140 = vector.broadcast %cst_47 : f32 to vector<8x9xf32>
    %141 = arith.subf %140, %139 : vector<8x9xf32>
    %142 = math.exp %141 : vector<8x9xf32>
    %143 = math.log1p %142 : vector<8x9xf32>
    %144 = arith.subf %138, %143 : vector<8x9xf32>
    %145 = vector.extract_strided_slice %144 {offsets = [0, 0], sizes = [8, 1], strides = [1, 1]} : vector<8x9xf32> to vector<8x1xf32>
    %146 = vector.shape_cast %145 : vector<8x1xf32> to vector<1x8x1xf32>
    %cst_48 = arith.constant dense<0.000000e+00> : vector<1xf32>
    %147 = vector.multi_reduction <add>, %146, %cst_48 [1, 2] : vector<1x8x1xf32> to vector<1xf32>
    %148 = vector.shape_cast %147 : vector<1xf32> to vector<1x1x1xf32>
    %149 = vector.extract %148[0, 0, 0] : f32 from vector<1x1x1xf32>
    %cst_49 = arith.constant 0.000000e+00 : f32
    %150 = arith.subf %cst_49, %149 : f32
    %cst_50 = arith.constant 8.000000e+00 : f32
    %151 = arith.divf %150, %cst_50 : f32
    %152 = vector.extract_strided_slice %144 {offsets = [0, 1], sizes = [8, 1], strides = [1, 1]} : vector<8x9xf32> to vector<8x1xf32>
    %153 = vector.shape_cast %152 : vector<8x1xf32> to vector<1x8x1xf32>
    %cst_51 = arith.constant dense<0.000000e+00> : vector<1xf32>
    %154 = vector.multi_reduction <add>, %153, %cst_51 [1, 2] : vector<1x8x1xf32> to vector<1xf32>
    %155 = vector.shape_cast %154 : vector<1xf32> to vector<1x1x1xf32>
    %156 = vector.extract %155[0, 0, 0] : f32 from vector<1x1x1xf32>
    %cst_52 = arith.constant 0.000000e+00 : f32
    %157 = arith.subf %cst_52, %156 : f32
    %cst_53 = arith.constant 8.000000e+00 : f32
    %158 = arith.divf %157, %cst_53 : f32
    %159 = vector.extract_strided_slice %144 {offsets = [0, 2], sizes = [8, 7], strides = [1, 1]} : vector<8x9xf32> to vector<8x7xf32>
    %160 = vector.shape_cast %159 : vector<8x7xf32> to vector<1x8x7xf32>
    %cst_54 = arith.constant dense<0.000000e+00> : vector<1xf32>
    %161 = vector.multi_reduction <add>, %160, %cst_54 [1, 2] : vector<1x8x7xf32> to vector<1xf32>
    %162 = vector.shape_cast %161 : vector<1xf32> to vector<1x1x1xf32>
    %163 = vector.extract %162[0, 0, 0] : f32 from vector<1x1x1xf32>
    %cst_55 = arith.constant 0.000000e+00 : f32
    %164 = arith.subf %cst_55, %163 : f32
    %cst_56 = arith.constant 5.600000e+01 : f32
    %165 = arith.divf %164, %cst_56 : f32
    %cst_57 = arith.constant 3.000000e-01 : f32
    %166 = arith.mulf %cst_57, %151 : f32
    %cst_58 = arith.constant 3.000000e-01 : f32
    %167 = arith.mulf %cst_58, %158 : f32
    %168 = arith.cmpf ogt, %165, %167 : f32
    %cst_59 = arith.constant 3.000000e-01 : f32
    %169 = arith.mulf %cst_59, %158 : f32
    %170 = arith.subf %165, %169 : f32
    %cst_60 = arith.constant 0.000000e+00 : f32
    %171 = arith.select %168, %170, %cst_60 : f32
    %172 = arith.addf %166, %171 : f32
    %c1 = arith.constant 1 : index
    %173 = memref.load %arg9[%c1] : memref<2xf32, #tpu.memory_space<smem>>
    memref.store %172, %arg9[%c1] : memref<2xf32, #tpu.memory_space<smem>>
    return
  }
}

</mosaic_0001>

<bundles_post_ra>
// kernel: _pugo_forward_jit.2
= control target key start
LH: loop header
LB: loop body
LE: loop exit
PB: predicated region body
PF: predicated region fallthrough
CT: control target
= control target key end

     0   :  { %v1265_v3 = vmov 0.0   ;;  %vm1266_vm0 = vmmov 0   ;;  %s1680_s0 = inlined_call_operand.vmem [shape: f32[1,128], index: 0, kind: input, shape index: {}]   ;;  %s1681_s1 = inlined_call_operand.vmem [shape: bf16[128,32], index: 1, kind: input, shape index: {}]   ;;  %s1682_s2 = inlined_call_operand.vmem [shape: s32[8,8], index: 2, kind: input, shape index: {}]   ;;  %s1683_s3 = inlined_call_operand.vmem [shape: f32[8,512], index: 3, kind: input, shape index: {}]   ;;  %s1684_s4 = inlined_call_operand.vmem [shape: f32[8,512], index: 4, kind: input, shape index: {}]   ;;  %s1685_s5 = inlined_call_operand.vmem [shape: f32[512,8], index: 5, kind: input, shape index: {}]   ;;  %s1686_s6 = inlined_call_operand.vmem [shape: f32[128,128], index: 6, kind: input, shape index: {}]   ;;  %s1687_s7 = inlined_call_operand.vmem [shape: f32[8,128], index: 7, kind: input, shape index: {}]   ;;  %s1688_s8 = inlined_call_operand.vmem [shape: f32[32], index: 8, kind: input, shape index: {}]   ;;  %s1689_s9 = inlined_call_operand.vmem [shape: f32[2], index: 9, kind: output, shape index: {}]  }
   0x1   :  { %v40_v0 = vld [vmem:[%s1686_s6] sm:$0xff]  ;;  %v918_v1 = vld [vmem:[%s1686_s6 + $0x8] sm:$0xff]  ;;  %v919_v2 = vld [vmem:[%s1686_s6 + $0x10] sm:$0xff]  ;;  %1087 = vmatprep.subr.bf16.mxu0 %v1265_v3  ;;  %1103 = vmatprep.mubr.msk.bf16.mxu0 %vm1266_vm0, %v1265_v3 }
   0x2   :  { %v962_v4 = vpack.c.bf16 %v918_v1, %v40_v0  ;;  %v920_v5 = vld [vmem:[%s1686_s6 + $0x18] sm:$0xff]  ;;  %v921_v6 = vld [vmem:[%s1686_s6 + $0x20] sm:$0xff]  ;;  %v922_v7 = vld [vmem:[%s1686_s6 + $0x28] sm:$0xff]  ;;  %1107 = vmatprep.subr.bf16.mxu1 %v1265_v3  ;;  %1123 = vmatprep.mubr.msk.bf16.mxu1 %vm1266_vm0, %v1265_v3 }
   0x3   :  { %v967_v8 = vpack.c.bf16 %v920_v5, %v919_v2  ;;  %v972_v9 = vpack.c.bf16 %v922_v7, %v921_v6  ;;  %v923_v10 = vld [vmem:[%s1686_s6 + $0x30] sm:$0xff]  ;;  %v924_v11 = vld [vmem:[%s1686_s6 + $0x38] sm:$0xff]  ;;  %v925_v12 = vld [vmem:[%s1686_s6 + $0x40] sm:$0xff] }
   0x4   :  { %963 = vst [vmem:[#allocation5] sm:$0xff] %v962_v4   ;;  %v977_v13 = vpack.c.bf16 %v924_v11, %v923_v10  ;;  %v926_v14 = vld [vmem:[%s1686_s6 + $0x48] sm:$0xff]  ;;  %v927_v15 = vld [vmem:[%s1686_s6 + $0x50] sm:$0xff]  ;;  %v928_v16 = vld [vmem:[%s1686_s6 + $0x58] sm:$0xff] }
   0x5   :  { %968 = vst [vmem:[#allocation5 + $0x8] sm:$0xff] %v967_v8   ;;  %973 = vst [vmem:[#allocation5 + $0x10] sm:$0xff] %v972_v9   ;;  %v982_v17 = vpack.c.bf16 %v926_v14, %v925_v12  ;;  %v987_v18 = vpack.c.bf16 %v928_v16, %v927_v15  ;;  %v929_v19 = vld [vmem:[%s1686_s6 + $0x60] sm:$0xff]  ;;  %v930_v20 = vld [vmem:[%s1686_s6 + $0x68] sm:$0xff] }
   0x6   :  { %v931_v21 = vld [vmem:[%s1686_s6 + $0x70] sm:$0xff]  ;;  %978 = vst [vmem:[#allocation5 + $0x18] sm:$0xff] %v977_v13   ;;  %v992_v22 = vpack.c.bf16 %v930_v20, %v929_v19  ;;  %v932_v23 = vld [vmem:[%s1686_s6 + $0x78] sm:$0xff]  ;;  %v33_v24 = vld [vmem:[%s1687_s7] sm:$0xff] }
   0x7   :  { %983 = vst [vmem:[#allocation5 + $0x20] sm:$0xff] %v982_v17   ;;  %988 = vst [vmem:[#allocation5 + $0x28] sm:$0xff] %v987_v18   ;;  %v997_v25 = vpack.c.bf16 %v932_v23, %v931_v21  ;;  %v37_v26 = vpack.c.bf16 %v1265_v3, %v33_v24  ;;  %v1235_v27 = vld [vmem:[%s1681_s1] sm:$0xff]   ;;  %v1236_v28 = vld [vmem:[%s1681_s1 + $0x8] sm:$0xff]  }
   0x8   :  { %993 = vst [vmem:[#allocation5 + $0x30] sm:$0xff] %v992_v22   ;;  %1108 = vmatpush3.bf16.msra.mxu1 %v1235_v27  ;;  %v1237_v30 = vld [vmem:[%s1681_s1 + $0x10] sm:$0xff]   ;;  %v1238_v32 = vld [vmem:[%s1681_s1 + $0x18] sm:$0xff]   ;;  %v1239_v35 = vld [vmem:[%s1681_s1 + $0x20] sm:$0xff]  }
   0x9   :  { %998 = vst [vmem:[#allocation5 + $0x38] sm:$0xff] %v997_v25   ;;  %39 = vst [vmem:[#allocation4] sm:$0xf] %v37_v26  ;;  %1109 = vmatprep.subr.bf16.mxu1 %v1265_v3 }
   0xb   :  { %v1227_v29 = vld [vmem:[#allocation5] sm:$0xff]  }
   0xc   :  { %1088 = vmatpush3.bf16.msra.mxu0 %v1227_v29  ;;  %v1228_v31 = vld [vmem:[#allocation5 + $0x8] sm:$0xff]   ;;  %1110 = vmatpush3.bf16.msra.mxu1 %v1236_v28  ;;  %v1229_v33 = vld [vmem:[#allocation5 + $0x10] sm:$0xff]  }
   0xd   :  { %1089 = vmatprep.subr.bf16.mxu0 %v1265_v3  ;;  %1111 = vmatprep.subr.bf16.mxu1 %v1265_v3  ;;  %v1230_v34 = vld [vmem:[#allocation5 + $0x18] sm:$0xff]  }
  0x10   :  { %1090 = vmatpush3.bf16.msra.mxu0 %v1228_v31  ;;  %1112 = vmatpush3.bf16.msra.mxu1 %v1237_v30 }
  0x11   :  { %1091 = vmatprep.subr.bf16.mxu0 %v1265_v3  ;;  %1113 = vmatprep.subr.bf16.mxu1 %v1265_v3 }
  0x14   :  { %1092 = vmatpush3.bf16.msra.mxu0 %v1229_v33  ;;  %1114 = vmatpush3.bf16.msra.mxu1 %v1238_v32 }
  0x15   :  { %1093 = vmatprep.subr.bf16.mxu0 %v1265_v3  ;;  %1115 = vmatprep.subr.bf16.mxu1 %v1265_v3 }
  0x16   :  { %14 = vsyncpa [#allocation3], 0  ;;  %v1231_v36 = vld [vmem:[#allocation5 + $0x20] sm:$0xff]   ;;  %v1232_v38 = vld [vmem:[#allocation5 + $0x28] sm:$0xff]   ;;  %vm421_vm5 = vcmask 261120   ;;  %vm495_vm10 = vcmask 7168  }
  0x17   :  { %v1240_v37 = vld [vmem:[%s1681_s1 + $0x28] sm:$0xff]   ;;  %v1233_v39 = vld [vmem:[#allocation5 + $0x30] sm:$0xff]   ;;  %v1234_v40 = vld [vmem:[#allocation5 + $0x38] sm:$0xff]   ;;  %vm497_vm11 = vcmask 15360   ;;  %vm499_vm12 = vcmask 23552   ;;  %vm501_vm13 = vcmask 31744  }
  0x18   :  { %1094 = vmatpush3.bf16.msra.mxu0 %v1230_v34  ;;  %1116 = vmatpush3.bf16.msra.mxu1 %v1239_v35  ;;  %v186_v41 = vld [vmem:[#allocation4] sm:$0xf]  ;;  %v1241_v42 = vld [vmem:[%s1681_s1 + $0x30] sm:$0xff]   ;;  %v1242_v43 = vld [vmem:[%s1681_s1 + $0x38] sm:$0xff]   ;;  %vm503_vm14 = vcmask 39936   ;;  %vm505_vm15 = vcmask 48128  }
  0x19   :  { %1095 = vmatprep.subr.bf16.mxu0 %v1265_v3  ;;  %1117 = vmatprep.subr.bf16.mxu1 %v1265_v3  ;;  %v537_v44 = vld [vmem:[%s1685_s5 + $0x80] sm:$0xff]  ;;  %v538_v45 = vld [vmem:[%s1685_s5 + $0x88] sm:$0xff]  ;;  %v539_v53 = vld [vmem:[%s1685_s5 + $0x90] sm:$0xff]  ;;  %vm507_vm0 = vcmask 56320  }
  0x1a   :  { %v569_v46 = vld [vmem:[%s1685_s5 + $0x180] sm:$0xff]  ;;  %v1127_v47 = vpack.c.bf16 %v538_v45, %v537_v44  ;;  %v570_v48 = vld [vmem:[%s1685_s5 + $0x188] sm:$0xff]  ;;  %v540_v54 = vld [vmem:[%s1685_s5 + $0x98] sm:$0xff]  ;;  %v1272_v44 = vmov 5   ;;  %v1273_v45 = vmov 6  }
  0x1b   :  { %v521_v49 = vld [vmem:[%s1685_s5] sm:$0xff]  ;;  %v522_v50 = vld [vmem:[%s1685_s5 + $0x8] sm:$0xff]  ;;  %v1159_v51 = vpack.c.bf16 %v570_v48, %v569_v46  ;;  %v1131_v55 = vpack.c.bf16 %v540_v54, %v539_v53  ;;  %v523_v56 = vld [vmem:[%s1685_s5 + $0x10] sm:$0xff]  ;;  %v1274_v46 = vmov 7  }
  0x1c   :  { %1096 = vmatpush3.bf16.msra.mxu0 %v1231_v36  ;;  %1118 = vmatpush3.bf16.msra.mxu1 %v1240_v37  ;;  %v1129_v52 = vpack.c.bf16 %v522_v50, %v521_v49  ;;  %v524_v57 = vld [vmem:[%s1685_s5 + $0x18] sm:$0xff]  ;;  %v541_v59 = vld [vmem:[%s1685_s5 + $0xa0] sm:$0xff]  ;;  %v542_v60 = vld [vmem:[%s1685_s5 + $0xa8] sm:$0xff] }
  0x1d   :  { %1097 = vmatprep.subr.bf16.mxu0 %v1265_v3  ;;  %1119 = vmatprep.subr.bf16.mxu1 %v1265_v3  ;;  %v1133_v58 = vpack.c.bf16 %v524_v57, %v523_v56  ;;  %v1135_v61 = vpack.c.bf16 %v542_v60, %v541_v59  ;;  %v525_v62 = vld [vmem:[%s1685_s5 + $0x20] sm:$0xff]  ;;  %v526_v63 = vld [vmem:[%s1685_s5 + $0x28] sm:$0xff]  ;;  %v543_v1 = vld [vmem:[%s1685_s5 + $0xb0] sm:$0xff] }
  0x1e   :  { %v1137_v0 = vpack.c.bf16 %v526_v63, %v525_v62  ;;  %v544_v2 = vld [vmem:[%s1685_s5 + $0xb8] sm:$0xff]  ;;  %v527_v5 = vld [vmem:[%s1685_s5 + $0x30] sm:$0xff]  ;;  %v545_v8 = vld [vmem:[%s1685_s5 + $0xc0] sm:$0xff] }
  0x1f   :  { %v1139_v4 = vpack.c.bf16 %v544_v2, %v543_v1  ;;  %v528_v6 = vld [vmem:[%s1685_s5 + $0x38] sm:$0xff]  ;;  %v546_v9 = vld [vmem:[%s1685_s5 + $0xc8] sm:$0xff]  ;;  %v529_v11 = vld [vmem:[%s1685_s5 + $0x40] sm:$0xff] }
  0x20   :  { %1098 = vmatpush3.bf16.msra.mxu0 %v1232_v38  ;;  %1120 = vmatpush3.bf16.msra.mxu1 %v1241_v42  ;;  %v1141_v7 = vpack.c.bf16 %v528_v6, %v527_v5  ;;  %v1143_v10 = vpack.c.bf16 %v546_v9, %v545_v8  ;;  %v530_v12 = vld [vmem:[%s1685_s5 + $0x48] sm:$0xff]  ;;  %v547_v14 = vld [vmem:[%s1685_s5 + $0xd0] sm:$0xff]  ;;  %v548_v15 = vld [vmem:[%s1685_s5 + $0xd8] sm:$0xff]  ;;  %v1270_v42 = vmov 1  }
  0x21   :  { %1099 = vmatprep.subr.bf16.mxu0 %v1265_v3  ;;  %1121 = vmatprep.subr.bf16.mxu1 %v1265_v3  ;;  %v1145_v13 = vpack.c.bf16 %v530_v12, %v529_v11  ;;  %v1147_v16 = vpack.c.bf16 %v548_v15, %v547_v14  ;;  %v531_v17 = vld [vmem:[%s1685_s5 + $0x50] sm:$0xff]  ;;  %v532_v18 = vld [vmem:[%s1685_s5 + $0x58] sm:$0xff]  ;;  %v549_v20 = vld [vmem:[%s1685_s5 + $0xe0] sm:$0xff] }
  0x22   :  { %v1149_v19 = vpack.c.bf16 %v532_v18, %v531_v17  ;;  %v550_v21 = vld [vmem:[%s1685_s5 + $0xe8] sm:$0xff]  ;;  %v533_v23 = vld [vmem:[%s1685_s5 + $0x60] sm:$0xff]  ;;  %v551_v26 = vld [vmem:[%s1685_s5 + $0xf0] sm:$0xff] }
  0x23   :  { %v1151_v22 = vpack.c.bf16 %v550_v21, %v549_v20  ;;  %v534_v24 = vld [vmem:[%s1685_s5 + $0x68] sm:$0xff]  ;;  %v552_v27 = vld [vmem:[%s1685_s5 + $0xf8] sm:$0xff]  ;;  %v535_v29 = vld [vmem:[%s1685_s5 + $0x70] sm:$0xff] }
  0x24   :  { %1100 = vmatpush3.bf16.msra.mxu0 %v1233_v39  ;;  %1122 = vmatpush3.bf16.msra.mxu1 %v1242_v43  ;;  %v1153_v25 = vpack.c.bf16 %v534_v24, %v533_v23  ;;  %v1155_v28 = vpack.c.bf16 %v552_v27, %v551_v26  ;;  %v536_v30 = vld [vmem:[%s1685_s5 + $0x78] sm:$0xff]  ;;  %v510_v32 = vld [vmem:[%s1683_s3 + $0x8] sm:$0xff]  ;;  %v509_v35 = vld [vmem:[%s1683_s3] sm:$0xff]  ;;  %v1267_v39 = vmov 2   ;;  %v1271_v43 = vmov 4  }
  0x25   :  { %1101 = vmatprep.subr.bf16.mxu0 %v1265_v3  ;;  %1160 = vmatprep.subr.bf16.mxu1 %v1159_v51  ;;  %v1157_v31 = vpack.c.bf16 %v536_v30, %v535_v29  ;;  %v514_v33 = vld [vmem:[%s1684_s4 + $0x8] sm:$0xff]  ;;  %v513_v36 = vld [vmem:[%s1684_s4] sm:$0xff]  ;;  %v512_v54 = vld [vmem:[%s1683_s3 + $0x18] sm:$0xff] }
  0x26   :  { %v518_v34 = vmul.f32 %v514_v33, %v510_v32  ;;  %v517_v37 = vmul.f32 %v513_v36, %v509_v35  ;;  %v411_v38 = vld [vmem:[%s1682_s2] sm:$0xff]  ;;  %1219 = vset.pattern.permute.xlu1 %v1267_v39  ;;  %v554_v53 = vld [vmem:[%s1685_s5 + $0x108] sm:$0xff]  ;;  %v571_v57 = vld [vmem:[%s1685_s5 + $0x190] sm:$0xff] }
  0x27   :  { %436 = vperm.xlu1 %1219, %v411_v38   ;;  %v933_v48 = vld [vmem:[%s1680_s0] ss:$0 sm:$0xff]  ;;  %v555_v1 = vld [vmem:[%s1685_s5 + $0x110] sm:$0xff]  ;;  %v556_v2 = vld [vmem:[%s1685_s5 + $0x118] sm:$0xff] }
  0x28   :  { %1102 = vmatpush3.bf16.msra.mxu0 %v1234_v40  ;;  %v1268_v40 = vmov 0   ;;  %v553_v50 = vld [vmem:[%s1685_s5 + $0x100] sm:$0xff]  ;;  %v574_v5 = vld [vmem:[%s1685_s5 + $0x1a8] sm:$0xff]  ;;  %v1165_v6 = vpack.c.bf16 %v556_v2, %v555_v1  ;;  %v576_v11 = vld [vmem:[%s1685_s5 + $0x1b8] sm:$0xff] }
  0x29   :  { %1128 = vmatprep.subr.bf16.mxu0 %v1127_v47  ;;  %1217 = vset.pattern.permute.xlu0 %v1268_v40  ;;  %v182_v47 = vld [vmem:[%s1688_s8] sm:$0x1]  ;;  %v558_v9 = vld [vmem:[%s1685_s5 + $0x128] sm:$0xff]  ;;  %v559_v14 = vld [vmem:[%s1685_s5 + $0x130] sm:$0xff] }
  0x2a   :  { %415 = vperm.xlu0 %1217, %v411_v38   ;;  %184 = vst [vmem:[#allocation6] sm:$0x1] %v182_v47  ;;  %v557_v8 = vld [vmem:[%s1685_s5 + $0x120] sm:$0xff]  ;;  %v560_v15 = vld [vmem:[%s1685_s5 + $0x138] sm:$0xff]  ;;  %v578_v17 = vld [vmem:[%s1685_s5 + $0x1c8] sm:$0xff] }
  0x2b   :  { %1104 = vmatmul.mubr.bf16.vlgmr.msra.gmra.mrb[0].mxu0 %v186_v41  ;;  %v1269_v41 = vmov 3   ;;  %v1169_v12 = vpack.c.bf16 %v558_v9, %v557_v8  ;;  %v1173_v18 = vpack.c.bf16 %v560_v15, %v559_v14  ;;  %v561_v20 = vld [vmem:[%s1685_s5 + $0x140] sm:$0xff]  ;;  %v562_v21 = vld [vmem:[%s1685_s5 + $0x148] sm:$0xff]  ;;  %v580_v23 = vld [vmem:[%s1685_s5 + $0x1d8] sm:$0xff] }
  0x2c   :  { %1130 = vmatpush3.bf16.msra.mxu0 %v1129_v52  ;;  %649 = vmatprep.mubr.f32.mxu0 %v518_v34  ;;  %v1177_v24 = vpack.c.bf16 %v562_v21, %v561_v20  ;;  %v563_v26 = vld [vmem:[%s1685_s5 + $0x150] sm:$0xff]  ;;  %v564_v27 = vld [vmem:[%s1685_s5 + $0x158] sm:$0xff]  ;;  %v582_v29 = vld [vmem:[%s1685_s5 + $0x1e8] sm:$0xff] }
  0x2d   :  { %1132 = vmatprep.subr.bf16.mxu0 %v1131_v55  ;;  %1220 = vset.pattern.permute.xlu1 %v1269_v41  ;;  %v516_v55 = vld [vmem:[%s1684_s4 + $0x18] sm:$0xff]  ;;  %v1181_v30 = vpack.c.bf16 %v564_v27, %v563_v26  ;;  %v565_v32 = vld [vmem:[%s1685_s5 + $0x160] sm:$0xff]  ;;  %v566_v33 = vld [vmem:[%s1685_s5 + $0x168] sm:$0xff] }
  0x2e   :  { %1218 = vset.pattern.permute.xlu0 %v1270_v42  ;;  %446 = vperm.xlu1 %1220, %v411_v38   ;;  %v520_v62 = vmul.f32 %v516_v55, %v512_v54  ;;  %v583_v34 = vld [vmem:[%s1685_s5 + $0x1f0] sm:$0xff]  ;;  %v584_v35 = vld [vmem:[%s1685_s5 + $0x1f8] sm:$0xff]  ;;  %v1185_v36 = vpack.c.bf16 %v566_v33, %v565_v32 }
  0x2f   :  { %426 = vperm.xlu0 %1218, %v411_v38   ;;  %v568_v39 = vld [vmem:[%s1685_s5 + $0x178] sm:$0xff]  ;;  %v511_v41 = vld [vmem:[%s1683_s3 + $0x10] sm:$0xff]  ;;  %s1275_s3 = smov 1  }
  0x30   :  { %1134 = vmatpush3.bf16.msra.mxu0 %v1133_v58  ;;  %v572_v58 = vld [vmem:[%s1685_s5 + $0x198] sm:$0xff]  ;;  %v515_v42 = vld [vmem:[%s1684_s4 + $0x10] sm:$0xff]  ;;  %s1276_s4 = smov 127  }
  0x31   :  { %1136 = vmatprep.subr.bf16.mxu0 %v1135_v61  ;;  %v1161_v61 = vpack.c.bf16 %v554_v53, %v553_v50  ;;  %v412_v50 = vlaneseq  ;;  %v942_v54 = vld [vmem:[#allocation6] ss:$0 sm:$0xff] }
  0x32   :  { %1221 = vset.pattern.permute.xlu1 %v1271_v43  ;;  %v519_v43 = vmul.f32 %v515_v42, %v511_v41 }
  0x33   :  { %1222 = vset.pattern.permute.xlu0 %v1272_v44  ;;  %456 = vperm.xlu1 %1221, %v411_v38  }
  0x34   :  { %1138 = vmatpush3.bf16.msra.mxu0 %v1137_v0  ;;  %466 = vperm.xlu0 %1222, %v411_v38   ;;  %v1163_v0 = vpack.c.bf16 %v572_v58, %v571_v57 }
  0x35   :  { %1140 = vmatprep.subr.bf16.mxu0 %v1139_v4  ;;  %v573_v4 = vld [vmem:[%s1685_s5 + $0x1a0] sm:$0xff] }
  0x37   :  { %1223 = vset.pattern.permute.xlu1 %v1273_v45 }
  0x38   :  { %1142 = vmatpush3.bf16.msra.mxu0 %v1141_v7  ;;  %1226 = vset.pattern.permute.xlu0 %v1268_v40  ;;  %v1167_v7 = vpack.c.bf16 %v574_v5, %v573_v4 }
  0x39   :  { %1144 = vmatprep.subr.bf16.mxu0 %v1143_v10  ;;  %476 = vperm.xlu1 %1223, %v411_v38   ;;  %v575_v10 = vld [vmem:[%s1685_s5 + $0x1b0] sm:$0xff] }
  0x3c   :  { %1146 = vmatpush3.bf16.msra.mxu0 %v1145_v13  ;;  %v1171_v13 = vpack.c.bf16 %v576_v11, %v575_v10 }
  0x3d   :  { %1148 = vmatprep.subr.bf16.mxu0 %v1147_v16  ;;  %1224 = vset.pattern.permute.xlu1 %v1274_v46  ;;  %v577_v16 = vld [vmem:[%s1685_s5 + $0x1c0] sm:$0xff] }
  0x3e   :  { %486 = vperm.xlu1 %1224, %v411_v38   ;;  %v567_v38 = vld [vmem:[%s1685_s5 + $0x170] sm:$0xff] }
  0x40   :  { %1150 = vmatpush3.bf16.msra.mxu0 %v1149_v19  ;;  %v1175_v19 = vpack.c.bf16 %v578_v17, %v577_v16 }
  0x41   :  { %1152 = vmatprep.subr.bf16.mxu0 %v1151_v22  ;;  %v579_v22 = vld [vmem:[%s1685_s5 + $0x1d0] sm:$0xff] }
  0x42   :  { %1225 = vset.pattern.permute.xlu1 %v1268_v40  ;;  %v1189_v40 = vpack.c.bf16 %v568_v39, %v567_v38 }
  0x44   :  { %1154 = vmatpush3.bf16.msra.mxu0 %v1153_v25  ;;  %v1179_v25 = vpack.c.bf16 %v580_v23, %v579_v22 }
  0x45   :  { %1156 = vmatprep.subr.bf16.mxu0 %v1155_v28  ;;  %v581_v28 = vld [vmem:[%s1685_s5 + $0x1e0] sm:$0xff]  ;;  %s1277_s5 = smov 126  }
  0x48   :  { %1158 = vmatpush3.bf16.msra.mxu0 %v1157_v31  ;;  %v1183_v31 = vpack.c.bf16 %v582_v29, %v581_v28 }
  0x4b   :  { %650 = vmatmul.mubr.f32.vlgmr.msra.gmra.mrb[4].mxu0 %v517_v37  ;;  %v1187_v37 = vpack.c.bf16 %v584_v35, %v583_v34 }
  0xa6   :  { %v437_v47 = vpop.permute.xlu1 %436 }
  0xfe   :  { %v292_v49 = vpop.f32.mrb[0].mxu0 }
  0xff   :  { %v293_v51 = vadd.f32 %v933_v48, %v292_v49  ;;  %v1105_v52 = vpop.f32.mrb[1].mxu0  ;;  %v447_v48 = vpop.permute.xlu1 %446 }
 0x100   :  { %v295_v56 = vpop.f32.mrb[2].mxu0  ;;  %v416_v49 = vpop.permute.xlu0 %415 }
 0x101   :  { %v298_v59 = vmax.f32 %v293_v51, 0.0  ;;  %v1106_v60 = vpop.f32.mrb[3].mxu0  ;;  %v413_v51 = vand.u32 127, %v412_v50 }
 0x103   :  { %v299_v63 = vpack.c.bf16 %v298_v59, %v298_v59  ;;  %v457_v52 = vpop.permute.xlu1 %456  ;;  %vm417_vm1 = vcmp.eq.s32.totalorder %v413_v51, %v416_v49  ;;  %vm438_vm4 = vcmp.eq.s32.totalorder %v413_v51, %v437_v47  ;;  %vm448_vm6 = vcmp.eq.s32.totalorder %v413_v51, %v447_v48 }
 0x104   :  { %v427_v53 = vpop.permute.xlu0 %426  ;;  %vm458_vm3 = vcmp.eq.s32.totalorder %v413_v51, %v457_v52  ;;  %v951_v55 = vsel %vm417_vm1, 1.0, %v1265_v3  ;;  %v953_v2 = vsel %vm438_vm4, 1.0, %v1265_v3  ;;  %v954_v9 = vsel %vm448_vm6, 1.0, %v1265_v3 }
 0x105   :  { %1124 = vmatmul.mubr.bf16.vlgmr.msra.gmra.mrb[0].mxu1 %v299_v63  ;;  %vm428_vm2 = vcmp.eq.s32.totalorder %v413_v51, %v427_v53  ;;  %v955_v60 = vsel %vm458_vm3, 1.0, %v1265_v3 }
 0x106   :  { %1162 = vmatpush3.bf16.msra.mxu1 %v1161_v61  ;;  %719 = vmatprep.mubr.f32.mxu1 %v520_v62  ;;  %v952_v56 = vsel %vm428_vm2, 1.0, %v1265_v3 }
 0x107   :  { %1164 = vmatprep.subr.bf16.mxu1 %v1163_v0  ;;  %v477_v61 = vpop.permute.xlu1 %476 }
 0x108   :  { %vm478_vm7 = vcmp.eq.s32.totalorder %v413_v51, %v477_v61  ;;  %v467_v4 = vpop.permute.xlu0 %466 }
 0x109   :  { %v957_v10 = vsel %vm478_vm7, 1.0, %v1265_v3  ;;  %vm468_vm8 = vcmp.eq.s32.totalorder %v413_v51, %v467_v4 }
 0x10a   :  { %1166 = vmatpush3.bf16.msra.mxu1 %v1165_v6  ;;  %v956_v16 = vsel %vm468_vm8, 1.0, %v1265_v3 }
 0x10b   :  { %1168 = vmatprep.subr.bf16.mxu1 %v1167_v7  ;;  %v487_v11 = vpop.permute.xlu1 %486 }
 0x10c   :  { %vm488_vm9 = vcmp.eq.s32.totalorder %v413_v51, %v487_v11 }
 0x10d   :  { %v958_v20 = vsel %vm488_vm9, 1.0, %v1265_v3 }
 0x10e   :  { %1170 = vmatpush3.bf16.msra.mxu1 %v1169_v12 }
 0x10f   :  { %1172 = vmatprep.subr.bf16.mxu1 %v1171_v13 }
 0x112   :  { %1174 = vmatpush3.bf16.msra.mxu1 %v1173_v18 }
 0x113   :  { %1176 = vmatprep.subr.bf16.mxu1 %v1175_v19 }
 0x116   :  { %1178 = vmatpush3.bf16.msra.mxu1 %v1177_v24 }
 0x117   :  { %1180 = vmatprep.subr.bf16.mxu1 %v1179_v25 }
 0x11a   :  { %1182 = vmatpush3.bf16.msra.mxu1 %v1181_v30 }
 0x11b   :  { %1184 = vmatprep.subr.bf16.mxu1 %v1183_v31 }
 0x11e   :  { %1186 = vmatpush3.bf16.msra.mxu1 %v1185_v36  ;;  %v1049_v44 = vpop.f32.mrb[4].mxu0 }
 0x11f   :  { %1188 = vmatprep.subr.bf16.mxu1 %v1187_v37  ;;  %v1050_v45 = vpop.f32.mrb[5].mxu0 }
 0x120   :  { %v1051_v46 = vadd.f32 %v1050_v45, %v1049_v44 }
 0x122   :  { %1190 = vmatpush3.bf16.msra.mxu1 %v1189_v40 }
 0x125   :  { %720 = vmatmul.mubr.f32.vlgmr.msra.gmra.mrb[4].mxu1 %v519_v43 }
 0x1d8   :  { %v405_v57 = vpop.f32.mrb[0].mxu1 }
 0x1d9   :  { %v406_v58 = vadd.f32 %v942_v54, %v405_v57  ;;  %v1125_v59 = vpop.f32.mrb[1].mxu1 }
 0x1da   :  { %v408_v62 = vpop.f32.mrb[2].mxu1 }
 0x1db   :  { %v1126_v63 = vpop.f32.mrb[3].mxu1  ;;  %v431_v0 = vmul.f32 %v952_v56, %v406_v58  ;;  %v420_v1 = vmul.f32 %v951_v55, %v406_v58  ;;  %v461_v7 = vmul.f32 %v955_v60, %v406_v58  ;;  %v441_v8 = vmul.f32 %v953_v2, %v406_v58 }
 0x1dc   :  { %v481_v14 = vmul.f32 %v957_v10, %v406_v58  ;;  %v451_v15 = vmul.f32 %v954_v9, %v406_v58  ;;  %v471_v19 = vmul.f32 %v956_v16, %v406_v58  ;;  %v491_v22 = vmul.f32 %v958_v20, %v406_v58 }
 0x1dd   :  { %v432_v5 = vsel %vm421_vm5, %v431_v0, 0.0  ;;  %v422_v6 = vsel %vm421_vm5, %v420_v1, 0.0  ;;  %v462_v12 = vsel %vm421_vm5, %v461_v7, 0.0  ;;  %v442_v13 = vsel %vm421_vm5, %v441_v8, 0.0 }
 0x1de   :  { %433 = vadd.xlane.f32.xlu1 %v432_v5  ;;  %423 = vadd.xlane.f32.xlu0 %v422_v6  ;;  %v482_v17 = vsel %vm421_vm5, %v481_v14, 0.0  ;;  %v452_v18 = vsel %vm421_vm5, %v451_v15, 0.0  ;;  %v472_v21 = vsel %vm421_vm5, %v471_v19, 0.0  ;;  %v492_v23 = vsel %vm421_vm5, %v491_v22, 0.0 }
 0x1e2   :  { %463 = vadd.xlane.f32.xlu1 %v462_v12  ;;  %443 = vadd.xlane.f32.xlu0 %v442_v13 }
 0x1e6   :  { %483 = vadd.xlane.f32.xlu1 %v482_v17  ;;  %453 = vadd.xlane.f32.xlu0 %v452_v18 }
 0x1ea   :  { %473 = vadd.xlane.f32.xlu0 %v472_v21 }
 0x1ee   :  { %493 = vadd.xlane.f32.xlu0 %v492_v23 }
 0x1f8   :  { %v1084_v24 = vpop.f32.mrb[4].mxu1 }
 0x1f9   :  { %v1085_v25 = vpop.f32.mrb[5].mxu1 }
 0x1fa   :  { %v1086_v26 = vadd.f32 %v1085_v25, %v1084_v24 }
 0x1fc   :  { %v722_v27 = vadd.f32 %v1086_v26, %v1051_v46 }
 0x1fe   :  { %v814_v43 = vsub.f32 0.0, %v722_v27 }
 0x204   :  { %817 = vperm.xlu0 %1226, %v722_v27  }
 0x26b   :  { %v424_v28 = vpop.xlane.xlu0 %423  ;;  %v434_v29 = vpop.xlane.xlu1 %433 }
 0x26c   :  { %v496_v3 = vsel %vm495_vm10, %v424_v28, %v434_v29 }
 0x26f   :  { %v444_v30 = vpop.xlane.xlu0 %443  ;;  %v464_v33 = vpop.xlane.xlu1 %463 }
 0x270   :  { %v498_v31 = vsel %vm497_vm11, %v496_v3, %v444_v30 }
 0x273   :  { %v454_v32 = vpop.xlane.xlu0 %453  ;;  %v484_v38 = vpop.xlane.xlu1 %483 }
 0x274   :  { %v500_v34 = vsel %vm499_vm12, %v498_v31, %v454_v32 }
 0x275   :  { %v502_v35 = vsel %vm501_vm13, %v500_v34, %v464_v33 }
 0x277   :  { %v474_v36 = vpop.xlane.xlu0 %473 }
 0x278   :  { %v504_v37 = vsel %vm503_vm14, %v502_v35, %v474_v36 }
 0x279   :  { %v506_v39 = vsel %vm505_vm15, %v504_v37, %v484_v38 }
 0x27b   :  { %v494_v40 = vpop.xlane.xlu0 %493 }
 0x27c   :  { %v508_v41 = vsel %vm507_vm0, %v506_v39, %v494_v40 }
 0x27d   :  { %728 = vperm.xlu1 %1225, %v508_v41   ;;  %v725_v42 = vsub.f32 0.0, %v508_v41 }
 0x27f   :  { %733 = vrot.lane.b32.xlu0 %v725_v42, %s1275_s3 }
 0x283   :  { %v818_v44 = vpop.permute.xlu0 %817  ;;  %822 = vrot.lane.b32.xlu0 %v814_v43, %s1275_s3 }
 0x284   :  { %v820_v45 = vsub.f32 %v818_v44, %v722_v27 }
 0x286   :  { %826 = vrot.lane.b32.xlu1 %v820_v45, %s1275_s3 }
 0x2f1   :  { %v734_v46 = vpop.permute.xlu0 %733 }
 0x2f2   :  { %v740_v5 = vsel %vm495_vm10, %v508_v41, %v734_v46 }
 0x2f5   :  { %v823_v48 = vpop.permute.xlu0 %822 }
 0x2f6   :  { %v829_v50 = vsel %vm495_vm10, %v722_v27, %v823_v48 }
 0x2fc   :  { %v729_v47 = vpop.permute.xlu1 %728 }
 0x2fd   :  { %v731_v49 = vsub.f32 %v729_v47, %v508_v41 }
 0x2ff   :  { %737 = vrot.lane.b32.xlu1 %v731_v49, %s1275_s3  ;;  %s909_s3 = sshll.u32 %s1689_s9, 4  ;;  %s910_s3 = int_to_ptr.vmem [resolvable:$true] %s909_s3 }
 0x300   :  { %v827_v51 = vpop.permute.xlu1 %826  ;;  %p1256_p3 = scmp.lt.s32.totalorder %s910_s3, %s910_s3 }
 0x301   :  { %v830_v52 = vsel %vm497_vm11, %v829_v50, %v827_v51 }
 0x302   :  { %v832_v53 = vand.u32 2147483647, %v830_v52  ;;  %v831_v0 = vmin.f32 %v830_v52, 0.0 }
 0x304   :  { %v833_v54 = vsub.f32 0.0, %v832_v53 }
 0x306   :  { %v834_v55 = vmul.f32 1.442695, %v833_v54 }
 0x308   :  { %1243 = vpow2.f32 %v834_v55 }
 0x312   :  { %v1244_v56 = vpop.eup %1243 }
 0x313   :  { %v836_v57 = vadd.f32 1.0, %v1244_v56  ;;  %v839_v58 = vmul.f32 -0.5, %v1244_v56  ;;  %v842_v60 = vand.u32 2147483647, %v1244_v56 }
 0x315   :  { %1245 = vlog2.f32 %v836_v57  ;;  %v840_v59 = vadd.f32 1.0, %v839_v58  ;;  %vm843_vm1 = vcmp.lt.f32.partialorder %v842_v60, 0.0004427343 }
 0x317   :  { %v841_v63 = vmul.f32 %v1244_v56, %v840_v59 }
 0x31f   :  { %v1246_v61 = vpop.eup %1245 }
 0x320   :  { %v838_v62 = vmul.f32 0.6931472, %v1246_v61 }
 0x322   :  { %v844_v1 = vsel %vm843_vm1, %v841_v63, %v838_v62 }
 0x323   :  { %v845_v2 = vsub.f32 %v831_v0, %v844_v1 }
 0x325   :  { %v846_v4 = vsel %vm495_vm10, %v845_v2, 0.0 }
 0x326   :  { %847 = vadd.xlane.f32.xlu1 %v846_v4 }
 0x371   :  { %v738_v6 = vpop.permute.xlu1 %737 }
 0x372   :  { %v741_v7 = vsel %vm497_vm11, %v740_v5, %v738_v6 }
 0x373   :  { %v743_v8 = vand.u32 2147483647, %v741_v7  ;;  %v742_v19 = vmin.f32 %v741_v7, 0.0 }
 0x375   :  { %v744_v9 = vsub.f32 0.0, %v743_v8 }
 0x377   :  { %v745_v10 = vmul.f32 1.442695, %v744_v9 }
 0x379   :  { %1247 = vpow2.f32 %v745_v10 }
 0x383   :  { %v1248_v11 = vpop.eup %1247 }
 0x384   :  { %v747_v12 = vadd.f32 1.0, %v1248_v11  ;;  %v750_v13 = vmul.f32 -0.5, %v1248_v11  ;;  %v753_v15 = vand.u32 2147483647, %v1248_v11 }
 0x386   :  { %1249 = vlog2.f32 %v747_v12  ;;  %v751_v14 = vadd.f32 1.0, %v750_v13  ;;  %vm754_vm2 = vcmp.lt.f32.partialorder %v753_v15, 0.0004427343 }
 0x388   :  { %v752_v18 = vmul.f32 %v1248_v11, %v751_v14 }
 0x390   :  { %v1250_v16 = vpop.eup %1249 }
 0x391   :  { %v749_v17 = vmul.f32 0.6931472, %v1250_v16 }
 0x393   :  { %v755_v20 = vsel %vm754_vm2, %v752_v18, %v749_v17 }
 0x394   :  { %v756_v21 = vsub.f32 %v742_v19, %v755_v20 }
 0x396   :  { %772 = vrot.lane.b32.xlu0 %v756_v21, %s1276_s4  ;;  %789 = vrot.lane.b32.xlu1 %v756_v21, %s1277_s5  ;;  %v757_v22 = vsel %vm495_vm10, %v756_v21, 0.0 }
 0x39a   :  { %861 = vrot.lane.b32.xlu0 %v845_v2, %s1276_s4 }
 0x3b3   :  { %v848_v26 = vpop.xlane.xlu1 %847 }
 0x3b4   :  { %v849_v38 = vrot.slane %v848_v26, 4 }
 0x3b6   :  { %v850_v41 = vadd.f32 %v849_v38, %v848_v26 }
 0x3b8   :  { %v851_v46 = vrot.slane %v850_v41, 2 }
 0x3ba   :  { %758 = vadd.xlane.f32.xlu1 %v757_v22  ;;  %v852_v53 = vadd.f32 %v851_v46, %v850_v41 }
 0x3bc   :  { %v853_v59 = vrot.slane %v852_v53, 1 }
 0x3be   :  { %v854_v63 = vadd.f32 %v853_v59, %v852_v53 }
 0x3cb   :  { %878 = vrot.lane.b32.xlu1 %v845_v2, %s1277_s5  ;;  %s1251_s5 = scalar_lea.vmem %s910_s3, 16 }
 0x3cc   :  { %p1252_p2 = scmp.ne.s32.totalorder %s910_s3, %s1251_s5  ;;  %p1257_p4 = scmp.lt.s32.totalorder %s1251_s5, %s1251_s5 }
 0x3ce   :  { %p1258_p5 = por %p1257_p4, %p1256_p3 }
 0x3d0   :  { %p1259_p6 = pnand %p1258_p5, %p1252_p2 }
 0x408   :  { %v773_v23 = vpop.permute.xlu0 %772  ;;  %v790_v28 = vpop.permute.xlu1 %789 }
 0x409   :  { %v775_v27 = vsel %vm495_vm10, %v773_v23, 0.0  ;;  %v792_v29 = vsel %vm507_vm0, %v790_v28, 0.0 }
 0x40c   :  { %v862_v24 = vpop.permute.xlu0 %861 }
 0x40d   :  { %v864_v25 = vsel %vm495_vm10, %v862_v24, 0.0 }
 0x40e   :  { %865 = vadd.xlane.f32.xlu0 %v864_v25 }
 0x412   :  { %776 = vadd.xlane.f32.xlu0 %v775_v27 }
 0x416   :  { %793 = vadd.xlane.f32.xlu0 %v792_v29 }
 0x447   :  { %v759_v30 = vpop.xlane.xlu1 %758 }
 0x448   :  { %v760_v3 = vrot.slane %v759_v30, 4 }
 0x44a   :  { %v761_v31 = vadd.f32 %v760_v3, %v759_v30 }
 0x44b   :  { %v879_v32 = vpop.permute.xlu1 %878 }
 0x44c   :  { %v762_v33 = vrot.slane %v761_v31, 2  ;;  %v881_v34 = vsel %vm507_vm0, %v879_v32, 0.0 }
 0x44d   :  { %882 = vadd.xlane.f32.xlu0 %v881_v34 }
 0x44e   :  { %v763_v35 = vadd.f32 %v762_v33, %v761_v31 }
 0x450   :  { %v764_v36 = vrot.slane %v763_v35, 1 }
 0x452   :  { %v765_v37 = vadd.f32 %v764_v36, %v763_v35 }
 0x454   :  { %1191 = vpush %v765_v37 }
 0x485   :  { %s1192_s12 = spop %1191 }
 0x486   :  { %s767_s13 = ssub.f32 0.0, %s1192_s12 }
 0x488   :  { %s770_s18 = smul.f32 0.125, %s767_s13 }
 0x48a   :  { %s806_s22 = smul.f32 0.3, %s770_s18 }
 0x49b   :  { %v866_v39 = vpop.xlane.xlu0 %865 }
 0x49c   :  { %v867_v40 = vrot.slane %v866_v39, 4 }
 0x49e   :  { %v868_v43 = vadd.f32 %v867_v40, %v866_v39 }
 0x49f   :  { %v777_v42 = vpop.xlane.xlu0 %776 }
 0x4a0   :  { %v778_v44 = vrot.slane %v777_v42, 4  ;;  %v869_v48 = vrot.slane %v868_v43, 2 }
 0x4a2   :  { %v779_v45 = vadd.f32 %v778_v44, %v777_v42  ;;  %v870_v56 = vadd.f32 %v869_v48, %v868_v43 }
 0x4a3   :  { %v794_v47 = vpop.xlane.xlu0 %793 }
 0x4a4   :  { %v780_v49 = vrot.slane %v779_v45, 2  ;;  %v795_v50 = vrot.slane %v794_v47, 4  ;;  %v871_v61 = vrot.slane %v870_v56, 1 }
 0x4a6   :  { %v796_v51 = vadd.f32 %v795_v50, %v794_v47  ;;  %v781_v52 = vadd.f32 %v780_v49, %v779_v45  ;;  %v872_v0 = vadd.f32 %v871_v61, %v870_v56 }
 0x4a8   :  { %v797_v54 = vrot.slane %v796_v51, 2  ;;  %v782_v55 = vrot.slane %v781_v52, 1 }
 0x4aa   :  { %v783_v57 = vadd.f32 %v782_v55, %v781_v52  ;;  %v798_v58 = vadd.f32 %v797_v54, %v796_v51 }
 0x4ac   :  { %1193 = vpush %v783_v57  ;;  %v799_v60 = vrot.slane %v798_v58, 1 }
 0x4ae   :  { %v800_v62 = vadd.f32 %v799_v60, %v798_v58 }
 0x4b0   :  { %1195 = vpush %v800_v62 }
 0x4b1   :  { %1197 = vpush %v854_v63 }
 0x4b2   :  { %1199 = vpush %v872_v0 }
 0x4da   :  { %v883_v1 = vpop.xlane.xlu0 %882 }
 0x4db   :  { %v884_v2 = vrot.slane %v883_v1, 4 }
 0x4dd   :  { %v885_v4 = vadd.f32 %v884_v2, %v883_v1  ;;  %s1194_s14 = spop %1193 }
 0x4de   :  { %s785_s15 = ssub.f32 0.0, %s1194_s14 }
 0x4df   :  { %v886_v5 = vrot.slane %v885_v4, 2 }
 0x4e0   :  { %s788_s16 = smul.f32 0.125, %s785_s15 }
 0x4e1   :  { %v887_v6 = vadd.f32 %v886_v5, %v885_v4  ;;  %s1196_s17 = spop %1195 }
 0x4e2   :  { %s802_s19 = ssub.f32 0.0, %s1196_s17  ;;  %s807_s20 = smul.f32 0.3, %s788_s16 }
 0x4e3   :  { %v888_v7 = vrot.slane %v887_v6, 1  ;;  %s1198_s1 = spop %1197 }
 0x4e4   :  { %s805_s2 = smul.f32 0.017857144, %s802_s19  ;;  %s1200_s24 = spop %1199 }
 0x4e5   :  { %v889_v8 = vadd.f32 %v888_v7, %v887_v6  ;;  %s874_s25 = ssub.f32 0.0, %s1200_s24 }
 0x4e6   :  { %p808_p0 = scmp.gt.f32.partialorder %s805_s2, %s807_s20  ;;  %s809_s21 = ssub.f32 %s805_s2, %s807_s20 }
 0x4e7   :  { %1201 = vpush %v889_v8  ;;  %s856_s6 = ssub.f32 0.0, %s1198_s1  ;;  %s877_s7 = smul.f32 0.125, %s874_s25 }
 0x4e8   :  { %s1691_s21 = smov (!%p808_p0, %s809_s21), 0.0 }
 0x4e9   :  { %s811_s23 = sadd.f32 %s1691_s21, %s806_s22  ;;  %s859_s8 = smul.f32 0.125, %s856_s6 }
 0x4ea   :  { %s896_s0 = smul.f32 0.3, %s877_s7 }
 0x4eb   :  { %813 = sst [smem:[#allocation2]] %s811_s23  ;;  %s895_s30 = smul.f32 0.3, %s859_s8 }
 0x518   :  { %s1202_s26 = spop %1201 }
 0x519   :  { %s891_s27 = ssub.f32 0.0, %s1202_s26 }
 0x51b   :  { %s894_s28 = smul.f32 0.017857144, %s891_s27 }
 0x51d   :  { %p897_p1 = scmp.gt.f32.partialorder %s894_s28, %s896_s0  ;;  %s898_s29 = ssub.f32 %s894_s28, %s896_s0 }
 0x51f   :  { %s1693_s29 = smov (!%p897_p1, %s898_s29), 0.0 }
 0x520   :  { %s900_s4 = sadd.f32 %s1693_s29, %s895_s30 }
 0x522   :  { %902 = sst [smem:[#allocation2 + $0x1]] %s900_s4 }
 0x523   :  { %1262 = shalt.err (!%p1259_p6)
}
 0x524   :  { %s1278_s12 = smov [#allocation2]  }
 0x525   :  { %912 = dma.smem_to_vmem %s1278_s12, 16, %s910_s3, [#allocation3]  }
 0x526   :  { %1263 = dma.done.wait [#allocation3], 16  }
 0x527   :  { %1264 = vsyncadd [#allocation3], 4294967280 }
 0x528   :  { %916 = sfence }
 0x529   :  { %917 = vsyncpa [#allocation3], 1 }

</bundles_post_ra>
